<compile_context>
chip_gen: v7x
topology: tpu7x:2x2x1
jax: 0.10.0
libtpu: 0.0.40
codegen_flags: <defaults>
</compile_context>

<pallas_src>
import jax
import jax.numpy as jnp
from jax.experimental import pallas as pl
from jax.experimental.pallas import tpu as pltpu


def ensemble_kernel(x_ref, wm_ref, bm_ref, w1_ref, b1_ref, o_ref):
    # Number of sub-models is a compile-time constant.
    n_models = wm_ref.shape[0]
    inv_m = 1.0 / n_models

    # Sum the stacked ensemble weights/biases over the model axis (VPU work,
    # a handful of vreg adds -- the whole stack is ~40 KB and resident).
    w_sum = jnp.sum(wm_ref[...], axis=0)                       # (D_in, H)
    b_sum = jnp.sum(bm_ref[...], axis=0, keepdims=True)        # (1, H)

    # mean_m(x @ W_m + b_m) == (x @ sum_m(W_m) + sum_m(b_m)) / M
    h = jnp.dot(x_ref[...], w_sum, preferred_element_type=jnp.float32)
    avg = (h + b_sum) * inv_m                                   # (B, H) f32

    # fc1: Linear(H -> N_out)
    o_ref[...] = (
        jnp.dot(avg, w1_ref[...], preferred_element_type=jnp.float32)
        + b1_ref[...]
    ).astype(o_ref.dtype)


def ensemble_forward(x, w_models, b_models, w_fc1, b_fc1):
    B, D_in = x.shape
    M, _, H = w_models.shape
    N_out = w_fc1.shape[1]

    return pl.pallas_call(
        ensemble_kernel,
        out_shape=jax.ShapeDtypeStruct((B, N_out), jnp.float32),
        grid_spec=pltpu.PrefetchScalarGridSpec(
            num_scalar_prefetch=0,
            grid=(1,),  # single step: everything resident, no pipeline overhead
            in_specs=[
                pl.BlockSpec((B, D_in), lambda i: (0, 0)),        # x
                pl.BlockSpec((M, D_in, H), lambda i: (0, 0, 0)),  # stacked W_m
                pl.BlockSpec((M, H), lambda i: (0, 0)),           # stacked b_m
                pl.BlockSpec((H, N_out), lambda i: (0, 0)),       # fc1 weight
                pl.BlockSpec((1, N_out), lambda i: (0, 0)),       # fc1 bias
            ],
            out_specs=pl.BlockSpec((B, N_out), lambda i: (0, 0)),
        ),
        compiler_params=pltpu.CompilerParams(
            dimension_semantics=("arbitrary",)
        ),
    )(x, w_models, b_models, w_fc1, b_fc1)


if __name__ == "__main__":
    # Small shapes consistent with the module.
    B = 8        # batch
    D_in = 32    # feature dim fed to each sub-model
    H = 32       # == `input` arg of EnsembleModel (fc1 in_features)
    M = 10       # number of sub-models
    N_out = 5    # fc1 out_features

    key = jax.random.PRNGKey(0)
    kx, kw, kb, kw1, kb1 = jax.random.split(key, 5)

    x = jax.random.normal(kx, (B, D_in), dtype=jnp.float32)
    w_models = jax.random.normal(kw, (M, D_in, H), dtype=jnp.float32) * 0.1
    b_models = jax.random.normal(kb, (M, H), dtype=jnp.float32) * 0.1
    w_fc1 = jax.random.normal(kw1, (H, N_out), dtype=jnp.float32) * 0.1
    b_fc1 = jax.random.normal(kb1, (1, N_out), dtype=jnp.float32) * 0.1

    out = ensemble_forward(x, w_models, b_models, w_fc1, b_fc1)
    out = jax.block_until_ready(out)

    # Pure-JAX reference check (explicit per-model ensemble, as in the module).
    ref = jnp.mean(
        jnp.einsum("bd,mdh->mbh", x, w_models) + b_models[:, None, :], axis=0
    )
    ref = ref @ w_fc1 + b_fc1
    assert out.shape == (B, N_out)
    assert jnp.allclose(out, ref, atol=1e-4, rtol=1e-4)

    print("KERNEL_OK")
</pallas_src>

<mosaic_0001>
module attributes {stable_mosaic.version = 11 : i64} {
  func.func @ensemble_kernel(%arg0: i32, %arg1: memref<8x32xf32, #tpu.memory_space<vmem>>, %arg2: memref<10x32x32xf32, #tpu.memory_space<vmem>>, %arg3: memref<10x32xf32, #tpu.memory_space<vmem>>, %arg4: memref<32x5xf32, #tpu.memory_space<vmem>>, %arg5: memref<1x5xf32, #tpu.memory_space<vmem>>, %arg6: memref<8x5xf32, #tpu.memory_space<vmem>>) attributes {dimension_semantics = [#tpu.dimension_semantics<arbitrary>], iteration_bounds = array<i64: 1>, scalar_prefetch = 0 : i64, scratch_operands = 0 : i64, tpu.core_type = #tpu.core_type<tc>, window_params = [{pipeline_mode = #tpu.pipeline_mode<synchronous>, transform_indices = @transform_0, window_bounds = array<i64: 8, 32>}, {pipeline_mode = #tpu.pipeline_mode<synchronous>, transform_indices = @transform_1, window_bounds = array<i64: 10, 32, 32>}, {pipeline_mode = #tpu.pipeline_mode<synchronous>, transform_indices = @transform_2, window_bounds = array<i64: 10, 32>}, {pipeline_mode = #tpu.pipeline_mode<synchronous>, transform_indices = @transform_3, window_bounds = array<i64: 32, 5>}, {pipeline_mode = #tpu.pipeline_mode<synchronous>, transform_indices = @transform_4, window_bounds = array<i64: 1, 5>}, {pipeline_mode = #tpu.pipeline_mode<synchronous>, transform_indices = @transform_5, window_bounds = array<i64: 8, 5>}]} {
    %c0 = arith.constant 0 : index
    %c0_0 = arith.constant 0 : index
    %c0_1 = arith.constant 0 : index
    %0 = vector.load %arg2[%c0, %c0_0, %c0_1] : memref<10x32x32xf32, #tpu.memory_space<vmem>>, vector<10x32x32xf32>
    %cst = arith.constant dense<0.000000e+00> : vector<32x32xf32>
    %1 = vector.multi_reduction <add>, %0, %cst [0] : vector<10x32x32xf32> to vector<32x32xf32>
    %c0_2 = arith.constant 0 : index
    %c0_3 = arith.constant 0 : index
    %2 = vector.load %arg3[%c0_2, %c0_3] : memref<10x32xf32, #tpu.memory_space<vmem>>, vector<10x32xf32>
    %cst_4 = arith.constant dense<0.000000e+00> : vector<32xf32>
    %3 = vector.multi_reduction <add>, %2, %cst_4 [0] : vector<10x32xf32> to vector<32xf32>
    %4 = vector.shape_cast %3 : vector<32xf32> to vector<1x32xf32>
    %c0_5 = arith.constant 0 : index
    %c0_6 = arith.constant 0 : index
    %5 = vector.load %arg1[%c0_5, %c0_6] : memref<8x32xf32, #tpu.memory_space<vmem>>, vector<8x32xf32>
    %cst_7 = arith.constant dense<0.000000e+00> : vector<8x32xf32>
    %6 = tpu.matmul %5, %1, %cst_7 {dimension_numbers = #tpu.dot_dimension_numbers<[1], [0], [0], [1], [0, 0, 1, 1], [], []>} : vector<8x32xf32>, vector<32x32xf32>, vector<8x32xf32> -> vector<8x32xf32>
    %7 = vector.broadcast %4 : vector<1x32xf32> to vector<8x32xf32>
    %8 = arith.addf %6, %7 : vector<8x32xf32>
    %cst_8 = arith.constant 1.000000e-01 : f32
    %9 = vector.broadcast %cst_8 : f32 to vector<8x32xf32>
    %10 = arith.mulf %8, %9 : vector<8x32xf32>
    %c0_9 = arith.constant 0 : index
    %c0_10 = arith.constant 0 : index
    %11 = vector.load %arg4[%c0_9, %c0_10] : memref<32x5xf32, #tpu.memory_space<vmem>>, vector<32x5xf32>
    %cst_11 = arith.constant dense<0.000000e+00> : vector<8x5xf32>
    %12 = tpu.matmul %10, %11, %cst_11 {dimension_numbers = #tpu.dot_dimension_numbers<[1], [0], [0], [1], [0, 0, 1, 1], [], []>} : vector<8x32xf32>, vector<32x5xf32>, vector<8x5xf32> -> vector<8x5xf32>
    %c0_12 = arith.constant 0 : index
    %c0_13 = arith.constant 0 : index
    %13 = vector.load %arg5[%c0_12, %c0_13] : memref<1x5xf32, #tpu.memory_space<vmem>>, vector<1x5xf32>
    %14 = vector.broadcast %13 : vector<1x5xf32> to vector<8x5xf32>
    %15 = arith.addf %12, %14 : vector<8x5xf32>
    %c0_14 = arith.constant 0 : index
    %c0_15 = arith.constant 0 : index
    %16 = vector.load %arg6[%c0_14, %c0_15] : memref<8x5xf32, #tpu.memory_space<vmem>>, vector<8x5xf32>
    tpu.vector_store %arg6[%c0_14, %c0_15], %15 {strides = array<i32>} : memref<8x5xf32, #tpu.memory_space<vmem>>, vector<8x5xf32>,
    return
  }
  func.func @transform_0(%arg0: i32) -> (i32, i32) {
    %c0_i32 = arith.constant 0 : i32
    %c0_i32_0 = arith.constant 0 : i32
    %c0_i32_1 = arith.constant 0 : i32
    return %c0_i32, %c0_i32_0 : i32, i32
  }
  func.func @transform_1(%arg0: i32) -> (i32, i32, i32) {
    %c0_i32 = arith.constant 0 : i32
    %c0_i32_0 = arith.constant 0 : i32
    %c0_i32_1 = arith.constant 0 : i32
    %c0_i32_2 = arith.constant 0 : i32
    return %c0_i32, %c0_i32_0, %c0_i32_1 : i32, i32, i32
  }
  func.func @transform_2(%arg0: i32) -> (i32, i32) {
    %c0_i32 = arith.constant 0 : i32
    %c0_i32_0 = arith.constant 0 : i32
    %c0_i32_1 = arith.constant 0 : i32
    return %c0_i32, %c0_i32_0 : i32, i32
  }
  func.func @transform_3(%arg0: i32) -> (i32, i32) {
    %c0_i32 = arith.constant 0 : i32
    %c0_i32_0 = arith.constant 0 : i32
    %c0_i32_1 = arith.constant 0 : i32
    return %c0_i32, %c0_i32_0 : i32, i32
  }
  func.func @transform_4(%arg0: i32) -> (i32, i32) {
    %c0_i32 = arith.constant 0 : i32
    %c0_i32_0 = arith.constant 0 : i32
    %c0_i32_1 = arith.constant 0 : i32
    return %c0_i32, %c0_i32_0 : i32, i32
  }
  func.func @transform_5(%arg0: i32) -> (i32, i32) {
    %c0_i32 = arith.constant 0 : i32
    %c0_i32_0 = arith.constant 0 : i32
    %c0_i32_1 = arith.constant 0 : i32
    return %c0_i32, %c0_i32_0 : i32, i32
  }
}

</mosaic_0001>

<bundles_post_ra>
// kernel: tpu_custom_call.1
= control target key start
LH: loop header
LB: loop body
LE: loop exit
PB: predicated region body
PF: predicated region fallthrough
CT: control target
= control target key end

     0   :  { %10 = vsyncpa [#allocation3], 0  ;;  %s574_s0 = inlined_call_operand.vmem [shape: f32[8,32], index: 0, kind: input, shape index: {}]   ;;  %s575_s1 = inlined_call_operand.hbm [shape: f32[10,32,32], index: 1, kind: input, shape index: {}]   ;;  %s576_s2 = inlined_call_operand.vmem [shape: f32[10,32], index: 2, kind: input, shape index: {}]   ;;  %s577_s3 = inlined_call_operand.vmem [shape: f32[32,5], index: 3, kind: input, shape index: {}]   ;;  %s578_s4 = inlined_call_operand.vmem [shape: f32[1,5], index: 4, kind: input, shape index: {}]   ;;  %s579_s5 = inlined_call_operand.hbm [shape: f32[8,5], index: 5, kind: output, shape index: {}]  }
   0x1   :  { %11 = vsyncpa [#allocation4], 0  ;;  %s442_s18 = smov [#allocation2]   ;;  %s394_s22 = scalar_lea.hbm %s575_s1, 5120 }
   0x2   :  { %s19_s19 = sshll.u32 %s442_s18, 4  ;;  %p395_p0 = scmp.ne.s32.totalorder %s575_s1, %s394_s22  ;;  %s20_s19 = int_to_ptr.vmem [resolvable:$true] %s19_s19 }
   0x3   :  { %p398_p1 = scmp.lt.u32.totalorder %s394_s22, %s575_s1 }
   0x5   :  { %p400_p2 = pnand %p398_p1, %p395_p0 }
   0x7   :  { %403 = shalt.err (!%p400_p2)
}
   0x8   :  { %s404_s27 = scalar_lea.vmem %s20_s19, 5120  ;;  %p409_p4 = scmp.lt.s32.totalorder %s20_s19, %s20_s19 }
   0x9   :  { %p405_p3 = scmp.ne.s32.totalorder %s20_s19, %s404_s27  ;;  %p410_p5 = scmp.lt.s32.totalorder %s404_s27, %s404_s27 }
   0xb   :  { %p411_p6 = por %p410_p5, %p409_p4 }
   0xd   :  { %p412_p7 = pnand %p411_p6, %p405_p3 }
   0xf   :  { %415 = shalt.err (!%p412_p7)
}
  0x10   :  { %s443_s28 = smov 128   ;;  %s444_s29 = smov 8  }
  0x11   :  { %25 = dma.hbm_to_vmem [thread:$0]  %s575_s1, 5120, %s20_s19, [#allocation3], %s443_s28, %s443_s28, %s444_s29  }
  0x12   :  { %438 = dma.done.wait [#allocation3], 5120  }
  0x13   :  { %439 = vsyncadd [#allocation3], 4294962176  ;;  %v445_v0 = vmov 0.0|0.0   ;;  %vm446_vm0 = vmmov 0   ;;  %v447_v1 = vmov 0.0   ;;  %vm75_vm1 = vcmask 261120  }
  0x14   :  { %375 = vmatprep.subr.bf16.mxu0 %v445_v0  ;;  %361 = vmatprep.mubr.msk.f32.mxu0 %vm446_vm0, %v447_v1  ;;  %v35_v2 = vld [vmem:[#allocation2] sm:$0xff]  ;;  %v36_v3 = vld [vmem:[#allocation2 + $0x8] sm:$0xff]  ;;  %v37_v34 = vld [vmem:[#allocation2 + $0x10] sm:$0xff]  ;;  %vm155_vm2 = vcmask 254976   ;;  %vm323_vm3 = vcmask 39936  }
  0x15   :  { %381 = vmatprep.subr.bf16.mxu1 %v445_v0  ;;  %372 = vmatprep.mubr.msk.f32.mxu1 %vm446_vm0, %v447_v1  ;;  %v39_v4 = vld [vmem:[#allocation2 + $0x20] sm:$0xff]  ;;  %v40_v5 = vld [vmem:[#allocation2 + $0x28] sm:$0xff]  ;;  %v76_v8 = vsel %vm75_vm1, %v35_v2, 0.0  ;;  %v95_v10 = vsel %vm75_vm1, %v36_v3, 0.0  ;;  %v38_v38 = vld [vmem:[#allocation2 + $0x18] sm:$0xff]  ;;  %v114_v41 = vsel %vm75_vm1, %v37_v34, 0.0 }
  0x16   :  { %v43_v6 = vld [vmem:[#allocation2 + $0x40] sm:$0xff]  ;;  %v44_v7 = vld [vmem:[#allocation2 + $0x48] sm:$0xff]  ;;  %v77_v9 = vsel %vm75_vm1, %v39_v4, 0.0  ;;  %v96_v16 = vsel %vm75_vm1, %v40_v5, 0.0  ;;  %v41_v39 = vld [vmem:[#allocation2 + $0x30] sm:$0xff]  ;;  %v133_v47 = vsel %vm75_vm1, %v38_v38, 0.0 }
  0x17   :  { %v47_v11 = vld [vmem:[#allocation2 + $0x60] sm:$0xff]  ;;  %v48_v12 = vld [vmem:[#allocation2 + $0x68] sm:$0xff]  ;;  %v78_v14 = vadd.f32 %v77_v9, %v76_v8  ;;  %v79_v15 = vsel %vm75_vm1, %v43_v6, 0.0  ;;  %v98_v17 = vsel %vm75_vm1, %v44_v7, 0.0  ;;  %v97_v21 = vadd.f32 %v96_v16, %v95_v10  ;;  %v42_v40 = vld [vmem:[#allocation2 + $0x38] sm:$0xff] }
  0x18   :  { %v51_v13 = vld [vmem:[#allocation2 + $0x80] sm:$0xff]  ;;  %v52_v18 = vld [vmem:[#allocation2 + $0x88] sm:$0xff]  ;;  %v81_v20 = vsel %vm75_vm1, %v47_v11, 0.0  ;;  %v100_v25 = vsel %vm75_vm1, %v48_v12, 0.0  ;;  %v45_v43 = vld [vmem:[#allocation2 + $0x50] sm:$0xff]  ;;  %v115_v46 = vsel %vm75_vm1, %v41_v39, 0.0 }
  0x19   :  { %v55_v19 = vld [vmem:[#allocation2 + $0xa0] sm:$0xff]  ;;  %v56_v22 = vld [vmem:[#allocation2 + $0xa8] sm:$0xff]  ;;  %v80_v24 = vadd.f32 %v79_v15, %v78_v14  ;;  %v83_v27 = vsel %vm75_vm1, %v51_v13, 0.0  ;;  %v99_v28 = vadd.f32 %v98_v17, %v97_v21  ;;  %v102_v33 = vsel %vm75_vm1, %v52_v18, 0.0  ;;  %v46_v44 = vld [vmem:[#allocation2 + $0x58] sm:$0xff] }
  0x1a   :  { %v59_v23 = vld [vmem:[#allocation2 + $0xc0] sm:$0xff]  ;;  %v60_v26 = vld [vmem:[#allocation2 + $0xc8] sm:$0xff]  ;;  %v85_v32 = vsel %vm75_vm1, %v55_v19, 0.0  ;;  %v104_v37 = vsel %vm75_vm1, %v56_v22, 0.0  ;;  %v49_v45 = vld [vmem:[#allocation2 + $0x70] sm:$0xff]  ;;  %v134_v48 = vsel %vm75_vm1, %v42_v40, 0.0  ;;  %v116_v53 = vadd.f32 %v115_v46, %v114_v41 }
  0x1b   :  { %v63_v29 = vld [vmem:[#allocation2 + $0xe0] sm:$0xff]  ;;  %v64_v30 = vld [vmem:[#allocation2 + $0xe8] sm:$0xff]  ;;  %v82_v31 = vadd.f32 %v81_v20, %v80_v24  ;;  %v87_v35 = vsel %vm75_vm1, %v59_v23, 0.0  ;;  %v101_v36 = vadd.f32 %v100_v25, %v99_v28  ;;  %v106_v50 = vsel %vm75_vm1, %v60_v26, 0.0  ;;  %v50_v51 = vld [vmem:[#allocation2 + $0x78] sm:$0xff] }
  0x1c   :  { %v53_v52 = vld [vmem:[#allocation2 + $0x90] sm:$0xff]  ;;  %v117_v54 = vsel %vm75_vm1, %v45_v43, 0.0  ;;  %v67_v55 = vld [vmem:[#allocation2 + $0x100] sm:$0xff]  ;;  %v68_v56 = vld [vmem:[#allocation2 + $0x108] sm:$0xff]  ;;  %v119_v58 = vsel %vm75_vm1, %v49_v45, 0.0  ;;  %v135_v59 = vadd.f32 %v134_v48, %v133_v47  ;;  %v136_v60 = vsel %vm75_vm1, %v46_v44, 0.0 }
  0x1d   :  { %v84_v42 = vadd.f32 %v83_v27, %v82_v31  ;;  %v103_v49 = vadd.f32 %v102_v33, %v101_v36  ;;  %v89_v61 = vsel %vm75_vm1, %v63_v29, 0.0  ;;  %v108_v63 = vsel %vm75_vm1, %v64_v30, 0.0  ;;  %v54_v1 = vld [vmem:[#allocation2 + $0x98] sm:$0xff]  ;;  %v57_v2 = vld [vmem:[#allocation2 + $0xb0] sm:$0xff]  ;;  %v71_v4 = vld [vmem:[#allocation2 + $0x120] sm:$0xff] }
  0x1e   :  { %v118_v3 = vadd.f32 %v117_v54, %v116_v53  ;;  %v58_v6 = vld [vmem:[#allocation2 + $0xb8] sm:$0xff]  ;;  %v121_v7 = vsel %vm75_vm1, %v53_v52, 0.0  ;;  %v137_v8 = vadd.f32 %v136_v60, %v135_v59  ;;  %v138_v9 = vsel %vm75_vm1, %v50_v51, 0.0  ;;  %v72_v10 = vld [vmem:[#allocation2 + $0x128] sm:$0xff]  ;;  %v61_v14 = vld [vmem:[#allocation2 + $0xd0] sm:$0xff] }
  0x1f   :  { %v86_v57 = vadd.f32 %v85_v32, %v84_v42  ;;  %v105_v62 = vadd.f32 %v104_v37, %v103_v49  ;;  %v91_v11 = vsel %vm75_vm1, %v67_v55, 0.0  ;;  %v110_v13 = vsel %vm75_vm1, %v68_v56, 0.0  ;;  %v62_v17 = vld [vmem:[#allocation2 + $0xd8] sm:$0xff]  ;;  %v239_v21 = vld [vmem:[%s577_s3] sm:$0xff]  ;;  %v240_v22 = vld [vmem:[%s577_s3 + $0x8] sm:$0xff] }
  0x20   :  { %v120_v15 = vadd.f32 %v119_v58, %v118_v3  ;;  %v123_v18 = vsel %vm75_vm1, %v57_v2, 0.0  ;;  %v139_v19 = vadd.f32 %v138_v9, %v137_v8  ;;  %v140_v20 = vsel %vm75_vm1, %v54_v1, 0.0  ;;  %v65_v25 = vld [vmem:[#allocation2 + $0xf0] sm:$0xff]  ;;  %v66_v30 = vld [vmem:[#allocation2 + $0xf8] sm:$0xff]  ;;  %v164_v60 = vld [vmem:[%s574_s0] sm:$0xff] }
  0x21   :  { %v88_v5 = vadd.f32 %v87_v35, %v86_v57  ;;  %v107_v12 = vadd.f32 %v106_v50, %v105_v62  ;;  %v93_v23 = vsel %vm75_vm1, %v71_v4, 0.0  ;;  %v142_v27 = vsel %vm75_vm1, %v58_v6, 0.0  ;;  %v69_v34 = vld [vmem:[#allocation2 + $0x110] sm:$0xff]  ;;  %v70_v39 = vld [vmem:[#allocation2 + $0x118] sm:$0xff]  ;;  %v153_v1 = vld [vmem:[%s576_s2 + $0x8] sm:$0x3] }
  0x22   :  { %v122_v26 = vadd.f32 %v121_v7, %v120_v15  ;;  %v112_v29 = vsel %vm75_vm1, %v72_v10, 0.0  ;;  %v125_v31 = vsel %vm75_vm1, %v61_v14, 0.0  ;;  %v141_v32 = vadd.f32 %v140_v20, %v139_v19  ;;  %v73_v43 = vld [vmem:[#allocation2 + $0x130] sm:$0xff]  ;;  %v74_v46 = vld [vmem:[#allocation2 + $0x138] sm:$0xff]  ;;  %v341_v15 = vld [vmem:[%s578_s4] ss:$0 sm:$0xff] }
  0x23   :  { %v90_v16 = vadd.f32 %v89_v61, %v88_v5  ;;  %v109_v24 = vadd.f32 %v108_v63, %v107_v12  ;;  %v144_v36 = vsel %vm75_vm1, %v62_v17, 0.0  ;;  %v382_v37 = vpack.c.bf16 %v240_v22, %v239_v21  ;;  %v241_v61 = vld [vmem:[%s577_s3 + $0x10] sm:$0xff]  ;;  %v242_v62 = vld [vmem:[%s577_s3 + $0x18] sm:$0xff]  ;;  %v152_v63 = vld [vmem:[%s576_s2] sm:$0xff]  ;;  %s448_s2 = smov [#allocation5]  }
  0x24   :  { %v124_v35 = vadd.f32 %v123_v18, %v122_v26  ;;  %v127_v40 = vsel %vm75_vm1, %v65_v25, 0.0  ;;  %v143_v41 = vadd.f32 %v142_v27, %v141_v32  ;;  %v146_v45 = vsel %vm75_vm1, %v66_v30, 0.0  ;;  %s331_s20 = sshll.u32 %s448_s2, 4  ;;  %s332_s20 = int_to_ptr.vmem [resolvable:$true] %s331_s20 }
  0x25   :  { %v92_v28 = vadd.f32 %v91_v11, %v90_v16  ;;  %v111_v33 = vadd.f32 %v110_v13, %v109_v24  ;;  %383 = vmatpush3.bf16.msra.mxu1 %v382_v37  ;;  %v129_v47 = vsel %vm75_vm1, %v69_v34, 0.0  ;;  %v148_v51 = vsel %vm75_vm1, %v70_v39, 0.0  ;;  %s416_s21 = scalar_lea.vmem %s332_s20, 128  ;;  %p421_p9 = scmp.lt.s32.totalorder %s332_s20, %s332_s20 }
  0x26   :  { %v126_v44 = vadd.f32 %v125_v31, %v124_v35  ;;  %v145_v48 = vadd.f32 %v144_v36, %v143_v41  ;;  %384 = vmatprep.subr.bf16.mxu1 %v445_v0  ;;  %v131_v52 = vsel %vm75_vm1, %v73_v43, 0.0  ;;  %v150_v55 = vsel %vm75_vm1, %v74_v46, 0.0  ;;  %p417_p8 = scmp.ne.s32.totalorder %s332_s20, %s416_s21  ;;  %p422_p10 = scmp.lt.s32.totalorder %s416_s21, %s416_s21 }
  0x27   :  { %v94_v38 = vadd.f32 %v93_v23, %v92_v28  ;;  %v113_v42 = vadd.f32 %v112_v29, %v111_v33  ;;  %v154_v2 = vsel %vm75_vm1, %v152_v63, 0.0  ;;  %v156_v3 = vsel %vm155_vm2, %v153_v1, 0.0 }
  0x28   :  { %v128_v50 = vadd.f32 %v127_v40, %v126_v44  ;;  %v147_v53 = vadd.f32 %v146_v45, %v145_v48  ;;  %v157_v4 = vadd.f32 %v156_v3, %v154_v2  ;;  %p423_p11 = por %p422_p10, %p421_p9 }
  0x29   :  { %v376_v49 = vpack.c.bf16 %v113_v42, %v94_v38 }
  0x2a   :  { %v130_v54 = vadd.f32 %v129_v47, %v128_v50  ;;  %v149_v56 = vadd.f32 %v148_v51, %v147_v53  ;;  %v158_v5 = vrot.slane %v157_v4, 4  ;;  %p424_p12 = pnand %p423_p11, %p417_p8 }
  0x2b   :  { %377 = vmatpush3.bf16.msra.mxu0 %v376_v49 }
  0x2c   :  { %378 = vmatprep.subr.bf16.mxu0 %v445_v0  ;;  %v132_v57 = vadd.f32 %v131_v52, %v130_v54  ;;  %v151_v58 = vadd.f32 %v150_v55, %v149_v56  ;;  %v385_v0 = vpack.c.bf16 %v242_v62, %v241_v61  ;;  %v159_v6 = vadd.f32 %v158_v5, %v157_v4 }
  0x2e   :  { %v379_v59 = vpack.c.bf16 %v151_v58, %v132_v57  ;;  %386 = vmatpush3.bf16.msra.mxu1 %v385_v0  ;;  %v160_v7 = vrot.slane %v159_v6, 2 }
  0x30   :  { %380 = vmatpush3.bf16.msra.mxu0 %v379_v59  ;;  %v161_v8 = vadd.f32 %v160_v7, %v159_v6 }
  0x32   :  { %v162_v9 = vrot.slane %v161_v8, 1 }
  0x33   :  { %362 = vmatmul.mubr.msk.f32.vlgmr.msra.gmra.mrb[0].mxu0 %vm75_vm1, %v164_v60 }
  0x34   :  { %v163_v10 = vadd.f32 %v162_v9, %v161_v8 }
 0x106   :  { %v234_v11 = vpop.f32.mrb[0].mxu0 }
 0x107   :  { %v235_v12 = vadd.f32 %v234_v11, %v163_v10  ;;  %v363_v13 = vpop.f32.mrb[1].mxu0 }
 0x109   :  { %v238_v14 = vmul.f32 0.1, %v235_v12 }
 0x10b   :  { %373 = vmatmul.mubr.msk.f32.vlgmr.msra.gmra.mrb[0].mxu1 %vm75_vm1, %v238_v14 }
 0x1de   :  { %v319_v16 = vpop.f32.mrb[0].mxu1 }
 0x1df   :  { %v320_v17 = vadd.f32 %v341_v15, %v319_v16  ;;  %v374_v18 = vpop.f32.mrb[1].mxu1 }
 0x1e1   :  { %324 = vst.msk [vmem:[#allocation5] sm:$0xff] %vm323_vm3, %v320_v17 }
 0x1e2   :  { %427 = shalt.err (!%p424_p12)
}
 0x1e3   :  { %s428_s24 = scalar_lea.hbm %s579_s5, 128 }
 0x1e4   :  { %p429_p13 = scmp.ne.s32.totalorder %s579_s5, %s428_s24  ;;  %p432_p0 = scmp.lt.u32.totalorder %s428_s24, %s579_s5 }
 0x1e6   :  { %p434_p1 = pnand %p432_p0, %p429_p13 }
 0x1e8   :  { %437 = shalt.err (!%p434_p1)
}
 0x1e9   :  { %334 = dma.vmem_to_hbm [thread:$0]  %s332_s20, 128, %s579_s5, [#allocation4]  }
 0x1ea   :  { %440 = dma.done.wait [#allocation4], 128  }
 0x1eb   :  { %441 = vsyncadd [#allocation4], 4294967168 }
 0x1ec   :  { %338 = vsyncpa [#allocation3], 1 }
 0x1ed   :  { %339 = vsyncpa [#allocation4], 1 }

</bundles_post_ra>
